<compile_context>
chip_gen: v7x
topology: tpu7x:2x2x1
jax: 0.10.0
libtpu: 0.0.40
codegen_flags: <defaults>
</compile_context>

<pallas_src>
import functools

import jax
import jax.numpy as jnp
import numpy as np
from jax import lax
from jax.experimental import pallas as pl
from jax.experimental.pallas import tpu as pltpu

_ACC_BYTES_LIMIT = 160 * 1024          # cap on the f32 register accumulator per step


def _round_up(x, m):
    return (x + m - 1) // m * m


# --------------------------------------------------------------------------------------
# Kernel: one (row-tile, batch) grid step of the folded stride-1 conv.
# --------------------------------------------------------------------------------------
def _basic_conv_kernel(x_ref, t_ref, scale_ref, bias_ref, o_ref, *, kh_taps, tile_ho, relu):
    """x_ref:     (1, 1, tile_win, WiCiP)   overlapping input-row window (lane-dense)
       t_ref:     (KHe, WiCiP, WoCoutP)     block-Toeplitz conv weights (grid-invariant)
       scale_ref: (1, WoCoutP) f32          folded BN scale  (per wo*Cout lane)
       bias_ref:  (1, WoCoutP) f32          folded BN/conv bias
       o_ref:     (1, tile_ho, WoCoutP)     lane-dense output row block
    """
    wo_cout = o_ref.shape[-1]
    acc = jnp.zeros((tile_ho, wo_cout), jnp.float32)
    # One lane-dense MXU matmul per kh tap: kw and Cin are merged into the contraction
    # (depth = WiCiP) by the block-Toeplitz weight; M = tile_ho, N = WoCoutP.
    for kh in range(kh_taps):
        acc = acc + jnp.dot(
            x_ref[0, 0, pl.ds(kh, tile_ho), :],
            t_ref[kh],
            preferred_element_type=jnp.float32)
    # BN (eval) + ReLU epilogue in f32 (scale is NOT folded into the bf16 weights).
    y = acc * scale_ref[...] + bias_ref[...]
    if relu:
        y = jnp.maximum(y, 0.0)
    o_ref[0] = y.astype(o_ref.dtype)


# --------------------------------------------------------------------------------------
# Weight-side constants (precompute once per weights + input spatial shape and reuse).
# --------------------------------------------------------------------------------------
def _build_conv_constants(weight_oihw, *, in_h, in_w, stride, padding,
                          gamma=None, beta=None, running_mean=None, running_var=None,
                          eps=1e-5, bn=True, conv_bias=None, compute_dtype=jnp.bfloat16):
    Cout, Cin, KH, KW = weight_oihw.shape
    Hp, Wp = in_h + 2 * padding, in_w + 2 * padding
    Ho = (Hp - KH) // stride + 1
    Wo = (Wp - KW) // stride + 1

    w = jnp.transpose(weight_oihw, (2, 3, 1, 0)).astype(jnp.float32)   # (KH, KW, Cin, Cout)

    # stride > 1: space-to-depth on the weights so the kernel only ever sees stride 1.
    if stride > 1:
        s = stride
        Ka, Kb = -(-KH // s), -(-KW // s)
        Hs, Ws = Ho + Ka - 1, Wo + Kb - 1
        w = jnp.pad(w, ((0, Ka * s - KH), (0, Kb * s - KW), (0, 0), (0, 0)))
        w = w.reshape(Ka, s, Kb, s, Cin, Cout).transpose(0, 2, 1, 3, 4, 5)
        w = w.reshape(Ka, Kb, s * s * Cin, Cout)
        KHe, KWe, Ci, Hi, Wi = Ka, Kb, s * s * Cin, Hs, Ws
    else:
        KHe, KWe, Ci, Hi, Wi = KH, KW, Cin, Hp, Wp
    assert Hi == Ho + KHe - 1 and Wi == Wo + KWe - 1

    # BN (eval) scale / bias, applied in the kernel's f32 epilogue.
    if bn:
        scale = gamma.astype(jnp.float32) / jnp.sqrt(running_var.astype(jnp.float32) + eps)
        bias = beta.astype(jnp.float32) - running_mean.astype(jnp.float32) * scale
    else:
        scale = jnp.ones((Cout,), jnp.float32)
        bias = jnp.zeros((Cout,), jnp.float32)
    if conv_bias is not None:
        bias = bias + conv_bias.astype(jnp.float32) * scale

    # Block-Toeplitz weights: T[kh, wi*Ci+ci, wo*Cout+co] = w[kh, wi-wo, ci, co] if valid.
    off = jnp.arange(Wi)[:, None] - jnp.arange(Wo)[None, :]            # (Wi, Wo)
    valid = (off >= 0) & (off < KWe)
    gath = w[:, jnp.clip(off, 0, KWe - 1), :, :]                       # (KHe, Wi, Wo, Ci, Cout)
    T = jnp.where(valid[None, :, :, None, None], gath, 0.0)
    T = jnp.transpose(T, (0, 1, 3, 2, 4)).reshape(KHe, Wi * Ci, Wo * Cout)

    # Pad lane dims to multiples of 128 (unmasked vld/vst, clean MXU K/N tiles).
    wi_ci_p = _round_up(Wi * Ci, 128)
    wo_co_p = _round_up(Wo * Cout, 128)
    T = jnp.pad(T, ((0, 0), (0, wi_ci_p - Wi * Ci), (0, wo_co_p - Wo * Cout)))
    if compute_dtype is not None:
        T = T.astype(compute_dtype)

    scale_fold = jnp.pad(jnp.tile(scale, (Wo,)), (0, wo_co_p - Wo * Cout)).reshape(1, wo_co_p)
    bias_fold = jnp.pad(jnp.tile(bias, (Wo,)), (0, wo_co_p - Wo * Cout)).reshape(1, wo_co_p)

    meta = dict(stride=stride, padding=padding, Cin=Cin, Cout=Cout, KH=KH, KW=KW,
                KHe=KHe, KWe=KWe, Ci=Ci, Hp=Hp, Wp=Wp, Hi=Hi, Wi=Wi, Ho=Ho, Wo=Wo,
                wi_ci_p=wi_ci_p, wo_co_p=wo_co_p)
    return T, scale_fold, bias_fold, meta


# --------------------------------------------------------------------------------------
# Apply (input-side layout glue + pallas_call).
# --------------------------------------------------------------------------------------
def _basic_conv_apply(x_nchw, T, scale_fold, bias_fold, meta, *, relu=True,
                      tile_ho=None, compute_dtype=jnp.bfloat16, out_dtype=None):
    m = meta
    N, Cin, H, W = x_nchw.shape
    if Cin != m["Cin"] or H + 2 * m["padding"] != m["Hp"] or W + 2 * m["padding"] != m["Wp"]:
        raise ValueError("input shape inconsistent with precomputed conv constants")
    out_dtype = out_dtype or x_nchw.dtype
    KHe, Ci, Hi, Wi = m["KHe"], m["Ci"], m["Hi"], m["Wi"]
    Ho, Wo, Cout = m["Ho"], m["Wo"], m["Cout"]
    wi_ci_p, wo_co_p = m["wi_ci_p"], m["wo_co_p"]

    # NCHW -> NHWC, spatial zero-pad.
    x = jnp.transpose(x_nchw, (0, 2, 3, 1))
    if m["padding"]:
        p = m["padding"]
        x = jnp.pad(x, ((0, 0), (p, p), (p, p), (0, 0)))

    # stride > 1: space-to-depth so the kernel only ever sees stride 1.
    if m["stride"] > 1:
        s = m["stride"]
        x = x[:, :Hi * s, :Wi * s, :]
        ph, pw = Hi * s - x.shape[1], Wi * s - x.shape[2]
        if ph > 0 or pw > 0:
            x = jnp.pad(x, ((0, 0), (0, ph), (0, pw), (0, 0)))
        x = x.reshape(N, Hi, s, Wi, s, Cin).transpose(0, 1, 3, 2, 4, 5).reshape(N, Hi, Wi, Ci)

    cdt = compute_dtype if compute_dtype is not None else x.dtype
    cbytes = jnp.dtype(cdt).itemsize
    obytes = jnp.dtype(out_dtype).itemsize
    sub_in = max(8, 32 // cbytes)        # sublane alignment for the input dtype
    sub_out = max(8, 32 // obytes)       # sublane alignment for the output dtype
    halo = KHe - 1

    # ---- tile_ho selection: fill the MXU M dim, bound acc + VMEM -----------------------
    acc_cap = max(sub_out, (_ACC_BYTES_LIMIT // (4 * wo_co_p)) // sub_out * sub_out)
    if tile_ho is None:
        tile_ho = 256                    # fills the 256-wide MXU on v6e/v7x; fine on v5e
    tile_ho = min(_round_up(tile_ho, sub_out), _round_up(Ho, sub_out), acc_cap)
    tile_ho = max(tile_ho, sub_out)

    try:
        vmem_cap = int(pltpu.get_tpu_info().vmem_capacity_bytes)
    except Exception:                    # pragma: no cover - conservative fallback (v7x)
        vmem_cap = 64 * 1024 * 1024
    budget = vmem_cap * 3 // 4

    t_bytes = 2 * T.size * T.dtype.itemsize        # grid-invariant but double-buffered

    def vmem_needed(th):
        tw = _round_up(th + halo, sub_in)
        return (2 * tw * wi_ci_p * cbytes          # input window (double-buffered)
                + t_bytes                          # Toeplitz weights
                + 2 * 2 * wo_co_p * 4              # scale + bias
                + 2 * th * wo_co_p * obytes)       # output tile (double-buffered)

    while tile_ho > sub_out and vmem_needed(tile_ho) > budget:
        tile_ho -= sub_out

    tile_win = _round_up(tile_ho + halo, sub_in)   # aligned window height (extra rows unused)
    ho_pad = _round_up(Ho, tile_ho)
    n_tiles = ho_pad // tile_ho
    rows_needed = (n_tiles - 1) * tile_ho + tile_win

    # Fold channels into lanes, pad rows + lanes, cast to compute dtype.
    x_fold = x.reshape(N, Hi, Wi * Ci)
    x_fold = jnp.pad(x_fold, ((0, 0), (0, rows_needed - Hi), (0, wi_ci_p - Wi * Ci)))
    if compute_dtype is not None:
        x_fold = x_fold.astype(compute_dtype)

    # Overlapping row windows (replaces the serial halo carry): window t = rows
    # [t*tile_ho, t*tile_ho + tile_win).  ~halo/tile_ho extra HBM traffic, fully parallel.
    row_idx = (jnp.arange(n_tiles) * tile_ho)[:, None] + jnp.arange(tile_win)[None, :]
    x_win = jnp.take(x_fold, row_idx.reshape(-1), axis=1)
    x_win = x_win.reshape(N, n_tiles, tile_win, wi_ci_p)

    kernel = functools.partial(_basic_conv_kernel, kh_taps=KHe, tile_ho=tile_ho, relu=relu)
    vmem_limit = int(min(budget, max(2 * vmem_needed(tile_ho), 32 * 1024 * 1024)))

    out = pl.pallas_call(
        kernel,
        out_shape=jax.ShapeDtypeStruct((N, ho_pad, wo_co_p), out_dtype),
        grid=(n_tiles, N),                                   # row tiles outermost (v7x megacore)
        in_specs=[
            pl.BlockSpec((1, 1, tile_win, wi_ci_p), lambda t, n: (n, t, 0, 0)),
            pl.BlockSpec((KHe, wi_ci_p, wo_co_p), lambda t, n: (0, 0, 0)),
            pl.BlockSpec((1, wo_co_p), lambda t, n: (0, 0)),
            pl.BlockSpec((1, wo_co_p), lambda t, n: (0, 0)),
        ],
        out_specs=pl.BlockSpec((1, tile_ho, wo_co_p), lambda t, n: (n, t, 0)),
        compiler_params=pltpu.CompilerParams(
            dimension_semantics=("parallel", "parallel"),
            vmem_limit_bytes=vmem_limit),
    )(x_win, T, scale_fold, bias_fold)

    out = out[:, :Ho, :Wo * Cout].reshape(N, Ho, Wo, Cout)
    return jnp.transpose(out, (0, 3, 1, 2))                  # back to NCHW


# --------------------------------------------------------------------------------------
# Convenience wrapper matching BasicConv.forward (eval-mode BN).
# --------------------------------------------------------------------------------------
def basic_conv(x_nchw, weight_oihw, gamma=None, beta=None, running_mean=None,
               running_var=None, *, stride=1, padding=0, dilation=1, groups=1,
               eps=1e-5, relu=True, bn=True, conv_bias=None, tile_ho=None,
               compute_dtype=jnp.bfloat16):
    if dilation != 1 or groups != 1:
        raise NotImplementedError("BasicConv Pallas kernel supports only dilation=1, groups=1")
    N, Cin, H, W = x_nchw.shape
    # NOTE: for repeated forwards with fixed weights, call _build_conv_constants once and
    # reuse (T, scale_fold, bias_fold, meta) with _basic_conv_apply.
    T, scale_fold, bias_fold, meta = _build_conv_constants(
        weight_oihw, in_h=H, in_w=W, stride=stride, padding=padding,
        gamma=gamma, beta=beta, running_mean=running_mean, running_var=running_var,
        eps=eps, bn=bn, conv_bias=conv_bias, compute_dtype=compute_dtype)
    return _basic_conv_apply(x_nchw, T, scale_fold, bias_fold, meta, relu=relu,
                             tile_ho=tile_ho, compute_dtype=compute_dtype)


def _reference(x_nchw, weight_oihw, gamma, beta, running_mean, running_var,
               *, stride, padding, eps, relu, bn):
    y = lax.conv_general_dilated(
        x_nchw, weight_oihw,
        window_strides=(stride, stride),
        padding=((padding, padding), (padding, padding)),
        dimension_numbers=("NCHW", "OIHW", "NCHW"))
    if bn:
        scale = (gamma / jnp.sqrt(running_var + eps)).reshape(1, -1, 1, 1)
        shift = (beta - running_mean * gamma / jnp.sqrt(running_var + eps)).reshape(1, -1, 1, 1)
        y = y * scale + shift
    if relu:
        y = jnp.maximum(y, 0.0)
    return y


if __name__ == "__main__":
    # BasicConv(in_planes=4, out_planes=8, kernel_size=3, stride=1, padding=1)
    N, Cin, H, W = 2, 4, 16, 16
    Cout, K = 8, 3

    key = jax.random.PRNGKey(0)
    kx, kw, kg, kb, km, kv = jax.random.split(key, 6)
    x = jax.random.normal(kx, (N, Cin, H, W), dtype=jnp.float32)
    weight = jax.random.normal(kw, (Cout, Cin, K, K), dtype=jnp.float32) * 0.1
    gamma = 0.5 + jax.random.uniform(kg, (Cout,), dtype=jnp.float32)
    beta = jax.random.normal(kb, (Cout,), dtype=jnp.float32) * 0.1
    running_mean = jax.random.normal(km, (Cout,), dtype=jnp.float32) * 0.1
    running_var = 0.5 + jax.random.uniform(kv, (Cout,), dtype=jnp.float32)

    ref1 = _reference(x, weight, gamma, beta, running_mean, running_var,
                      stride=1, padding=1, eps=1e-5, relu=True, bn=True)

    # f32 compute path, stride=1: tight check.
    out1 = jax.block_until_ready(basic_conv(
        x, weight, gamma, beta, running_mean, running_var,
        stride=1, padding=1, relu=True, bn=True, compute_dtype=jnp.float32))
    np.testing.assert_allclose(np.asarray(out1), np.asarray(ref1), rtol=1e-4, atol=1e-4)

    # f32 compute path, stride=2 (space-to-depth in the wrapper; kernel still stride-1).
    ref2 = _reference(x, weight, gamma, beta, running_mean, running_var,
                      stride=2, padding=1, eps=1e-5, relu=True, bn=True)
    out2 = jax.block_until_ready(basic_conv(
        x, weight, gamma, beta, running_mean, running_var,
        stride=2, padding=1, relu=True, bn=True, compute_dtype=jnp.float32))
    np.testing.assert_allclose(np.asarray(out2), np.asarray(ref2), rtol=1e-4, atol=1e-4)

    # Multi-row-tile path (small tile purely to exercise the overlapping-window grid at
    # these tiny demo shapes; defaults pick the largest tile that fits).
    out3 = jax.block_until_ready(basic_conv(
        x, weight, gamma, beta, running_mean, running_var,
        stride=1, padding=1, relu=True, bn=True, tile_ho=8, compute_dtype=jnp.float32))
    np.testing.assert_allclose(np.asarray(out3), np.asarray(ref1), rtol=1e-4, atol=1e-4)

    # Default path: bf16 MXU inputs, f32 accumulation + f32 BN/ReLU epilogue.
    out4 = jax.block_until_ready(basic_conv(
        x, weight, gamma, beta, running_mean, running_var,
        stride=1, padding=1, relu=True, bn=True))
    np.testing.assert_allclose(np.asarray(out4), np.asarray(ref1), rtol=1e-1, atol=1e-1)

    print("KERNEL_OK")
</pallas_src>

<mosaic_0001>
module attributes {stable_mosaic.version = 11 : i64} {
  func.func @_basic_conv_kernel(%arg0: i32, %arg1: i32, %arg2: memref<1x1x24x128xf32, #tpu.memory_space<vmem>>, %arg3: memref<3x128x128xf32, #tpu.memory_space<vmem>>, %arg4: memref<1x128xf32, #tpu.memory_space<vmem>>, %arg5: memref<1x128xf32, #tpu.memory_space<vmem>>, %arg6: memref<1x16x128xf32, #tpu.memory_space<vmem>>) attributes {dimension_semantics = [#tpu.dimension_semantics<parallel>, #tpu.dimension_semantics<parallel>], iteration_bounds = array<i64: 1, 2>, scalar_prefetch = 0 : i64, scratch_operands = 0 : i64, tpu.core_type = #tpu.core_type<tc>, window_params = [{transform_indices = @transform_0, window_bounds = array<i64: 1, 1, 24, 128>}, {pipeline_mode = #tpu.pipeline_mode<synchronous>, transform_indices = @transform_1, window_bounds = array<i64: 3, 128, 128>}, {pipeline_mode = #tpu.pipeline_mode<synchronous>, transform_indices = @transform_2, window_bounds = array<i64: 1, 128>}, {pipeline_mode = #tpu.pipeline_mode<synchronous>, transform_indices = @transform_3, window_bounds = array<i64: 1, 128>}, {transform_indices = @transform_4, window_bounds = array<i64: 1, 16, 128>}]} {
    %cst = arith.constant 0.000000e+00 : f32
    %0 = vector.broadcast %cst : f32 to vector<16x128xf32>
    %c0 = arith.constant 0 : index
    %c0_0 = arith.constant 0 : index
    %c0_1 = arith.constant 0 : index
    %c0_2 = arith.constant 0 : index
    %1 = vector.load %arg2[%c0, %c0_0, %c0_1, %c0_2] : memref<1x1x24x128xf32, #tpu.memory_space<vmem>>, vector<1x1x16x128xf32>
    %2 = vector.shape_cast %1 : vector<1x1x16x128xf32> to vector<16x128xf32>
    %c0_3 = arith.constant 0 : index
    %c0_4 = arith.constant 0 : index
    %c0_5 = arith.constant 0 : index
    %3 = vector.load %arg3[%c0_3, %c0_4, %c0_5] : memref<3x128x128xf32, #tpu.memory_space<vmem>>, vector<1x128x128xf32>
    %4 = vector.shape_cast %3 : vector<1x128x128xf32> to vector<128x128xf32>
    %cst_6 = arith.constant dense<0.000000e+00> : vector<16x128xf32>
    %5 = tpu.matmul %2, %4, %cst_6 {dimension_numbers = #tpu.dot_dimension_numbers<[1], [0], [0], [1], [0, 0, 1, 1], [], []>} : vector<16x128xf32>, vector<128x128xf32>, vector<16x128xf32> -> vector<16x128xf32>
    %6 = arith.addf %0, %5 : vector<16x128xf32>
    %c0_7 = arith.constant 0 : index
    %c0_8 = arith.constant 0 : index
    %c1 = arith.constant 1 : index
    %c0_9 = arith.constant 0 : index
    %7 = vector.load %arg2[%c0_7, %c0_8, %c1, %c0_9] : memref<1x1x24x128xf32, #tpu.memory_space<vmem>>, vector<1x1x16x128xf32>
    %8 = vector.shape_cast %7 : vector<1x1x16x128xf32> to vector<16x128xf32>
    %c1_10 = arith.constant 1 : index
    %c0_11 = arith.constant 0 : index
    %c0_12 = arith.constant 0 : index
    %9 = vector.load %arg3[%c1_10, %c0_11, %c0_12] : memref<3x128x128xf32, #tpu.memory_space<vmem>>, vector<1x128x128xf32>
    %10 = vector.shape_cast %9 : vector<1x128x128xf32> to vector<128x128xf32>
    %cst_13 = arith.constant dense<0.000000e+00> : vector<16x128xf32>
    %11 = tpu.matmul %8, %10, %cst_13 {dimension_numbers = #tpu.dot_dimension_numbers<[1], [0], [0], [1], [0, 0, 1, 1], [], []>} : vector<16x128xf32>, vector<128x128xf32>, vector<16x128xf32> -> vector<16x128xf32>
    %12 = arith.addf %6, %11 : vector<16x128xf32>
    %c0_14 = arith.constant 0 : index
    %c0_15 = arith.constant 0 : index
    %c2 = arith.constant 2 : index
    %c0_16 = arith.constant 0 : index
    %13 = vector.load %arg2[%c0_14, %c0_15, %c2, %c0_16] : memref<1x1x24x128xf32, #tpu.memory_space<vmem>>, vector<1x1x16x128xf32>
    %14 = vector.shape_cast %13 : vector<1x1x16x128xf32> to vector<16x128xf32>
    %c2_17 = arith.constant 2 : index
    %c0_18 = arith.constant 0 : index
    %c0_19 = arith.constant 0 : index
    %15 = vector.load %arg3[%c2_17, %c0_18, %c0_19] : memref<3x128x128xf32, #tpu.memory_space<vmem>>, vector<1x128x128xf32>
    %16 = vector.shape_cast %15 : vector<1x128x128xf32> to vector<128x128xf32>
    %cst_20 = arith.constant dense<0.000000e+00> : vector<16x128xf32>
    %17 = tpu.matmul %14, %16, %cst_20 {dimension_numbers = #tpu.dot_dimension_numbers<[1], [0], [0], [1], [0, 0, 1, 1], [], []>} : vector<16x128xf32>, vector<128x128xf32>, vector<16x128xf32> -> vector<16x128xf32>
    %18 = arith.addf %12, %17 : vector<16x128xf32>
    %c0_21 = arith.constant 0 : index
    %c0_22 = arith.constant 0 : index
    %19 = vector.load %arg4[%c0_21, %c0_22] : memref<1x128xf32, #tpu.memory_space<vmem>>, vector<1x128xf32>
    %20 = vector.broadcast %19 : vector<1x128xf32> to vector<16x128xf32>
    %21 = arith.mulf %18, %20 : vector<16x128xf32>
    %c0_23 = arith.constant 0 : index
    %c0_24 = arith.constant 0 : index
    %22 = vector.load %arg5[%c0_23, %c0_24] : memref<1x128xf32, #tpu.memory_space<vmem>>, vector<1x128xf32>
    %23 = vector.broadcast %22 : vector<1x128xf32> to vector<16x128xf32>
    %24 = arith.addf %21, %23 : vector<16x128xf32>
    %cst_25 = arith.constant 0.000000e+00 : f32
    %25 = vector.broadcast %cst_25 : f32 to vector<16x128xf32>
    %26 = arith.maximumf %24, %25 : vector<16x128xf32>
    %c0_26 = arith.constant 0 : index
    %c0_27 = arith.constant 0 : index
    %c0_28 = arith.constant 0 : index
    %27 = vector.load %arg6[%c0_26, %c0_27, %c0_28] : memref<1x16x128xf32, #tpu.memory_space<vmem>>, vector<1x16x128xf32>
    %28 = vector.shape_cast %27 : vector<1x16x128xf32> to vector<16x128xf32>
    %29 = vector.shape_cast %26 : vector<16x128xf32> to vector<1x16x128xf32>
    tpu.vector_store %arg6[%c0_26, %c0_27, %c0_28], %29 {strides = array<i32>} : memref<1x16x128xf32, #tpu.memory_space<vmem>>, vector<1x16x128xf32>,
    return
  }
  func.func @transform_0(%arg0: i32, %arg1: i32) -> (i32, i32, i32, i32) {
    %c0_i32 = arith.constant 0 : i32
    %c0_i32_0 = arith.constant 0 : i32
    %c0_i32_1 = arith.constant 0 : i32
    return %arg1, %arg0, %c0_i32, %c0_i32_0 : i32, i32, i32, i32
  }
  func.func @transform_1(%arg0: i32, %arg1: i32) -> (i32, i32, i32) {
    %c0_i32 = arith.constant 0 : i32
    %c0_i32_0 = arith.constant 0 : i32
    %c0_i32_1 = arith.constant 0 : i32
    %c0_i32_2 = arith.constant 0 : i32
    return %c0_i32, %c0_i32_0, %c0_i32_1 : i32, i32, i32
  }
  func.func @transform_2(%arg0: i32, %arg1: i32) -> (i32, i32) {
    %c0_i32 = arith.constant 0 : i32
    %c0_i32_0 = arith.constant 0 : i32
    %c0_i32_1 = arith.constant 0 : i32
    return %c0_i32, %c0_i32_0 : i32, i32
  }
  func.func @transform_3(%arg0: i32, %arg1: i32) -> (i32, i32) {
    %c0_i32 = arith.constant 0 : i32
    %c0_i32_0 = arith.constant 0 : i32
    %c0_i32_1 = arith.constant 0 : i32
    return %c0_i32, %c0_i32_0 : i32, i32
  }
  func.func @transform_4(%arg0: i32, %arg1: i32) -> (i32, i32, i32) {
    %c0_i32 = arith.constant 0 : i32
    %c0_i32_0 = arith.constant 0 : i32
    return %arg1, %arg0, %c0_i32 : i32, i32, i32
  }
}

</mosaic_0001>

<bundles_post_ra>
// kernel: tpu_custom_call.1
= control target key start
LH: loop header
LB: loop body
LE: loop exit
PB: predicated region body
PF: predicated region fallthrough
CT: control target
= control target key end

     0   :  { %9 = vsyncpa [#allocation3], 0  ;;  %s1436_s0 = inlined_call_operand.hbm [shape: f32[2,1,24,128], index: 0, kind: input, shape index: {}]   ;;  %s1437_s1 = inlined_call_operand.hbm [shape: f32[3,128,128], index: 1, kind: input, shape index: {}]   ;;  %s1438_s2 = inlined_call_operand.vmem [shape: f32[1,128], index: 2, kind: input, shape index: {}]   ;;  %s1439_s3 = inlined_call_operand.vmem [shape: f32[1,128], index: 3, kind: input, shape index: {}]   ;;  %s1440_s4 = inlined_call_operand.hbm [shape: f32[2,16,128], index: 4, kind: output, shape index: {}]  }
   0x1   :  { %11 = vsyncpa [#allocation3 + $0x1], 0 }
   0x2   :  { %12 = vsyncpa [#allocation6], 0 }
   0x3   :  { %13 = vsyncpa [#allocation4], 0 }
   0x4   :  { %15 = vsyncpa [#allocation4 + $0x1], 0  ;;  %s1202_s15 = smov 0   ;;  %s1204_s16 = smov 0  }
   0x5   :  { %s1206_s17 = smov 0   ;;  %s1208_s18 = smov 0  }
   0x6   :  { %s1210_s19 = smov 0   ;;  %s1212_s20 = smov 0  }
   0x7 LB: > { %s668_s21 = sadd.s32 4294967295, %s1168_s20   ;;  %s669_s22 = sadd.s32 4294967294, %s1168_s20   ;;  %s1168_s20 = sphi %s1212_s20, %s21_s20   ;;  %s1164_s19 = sphi %s1210_s19, %s1463_s19   ;;  %s1160_s18 = sphi %s1208_s18, %s1462_s18   ;;  %s1156_s17 = sphi %s1206_s17, %s1461_s17   ;;  %s1152_s16 = sphi %s1204_s16, %s1460_s16   ;;  %s1148_s15 = sphi %s1202_s15, %s1459_s15  }
   0x8   : > { %p55_p0 = scmp.ne.s32.totalorder %s1152_s16, %s1148_s15  ;;  %p1236_p1 = scmp.eq.s32.totalorder %s668_s21, 0 }
   0x9   : > { %p1240_p2 = scmp.eq.s32.totalorder %s668_s21, 1  ;;  %p150_p3 = scmp.eq.s32.totalorder %s669_s22, 1 }
   0xa   : > { %s1445_s23 = scalar_select %p1236_p1, 1, 0 }
   0xb   : > { %s1446_s24 = scalar_select %p1240_p2, 1, 0 }
   0xc   : > { %p1246_p4 = por %p1236_p1, %p55_p0  ;;  %p670_p5 = scmp.ge.s32.totalorder %s1168_s20, 1 }
   0xd   : > { %p1251_p6 = por %p150_p3, %p55_p0  ;;  %p157_p7 = scmp.lt.s32.totalorder %s1168_s20, 3 }
   0xe   : > { %s1447_s25 = scalar_select %p1246_p4, 1, 0 }
   0xf   : > { %s1448_s26 = scalar_select %p1251_p6, 1, 0 }
  0x10   : > { %p1256_p8 = pnand %p670_p5, %p157_p7  ;;  %s1170_s28 = smov [#allocation5]  }
  0x11   : > { %s169_s29 = sshll.u32 %s1170_s28, 4  ;;  %s30_s5 = sadd.s32 1, %s1164_s19  ;;  %s170_s29 = int_to_ptr.vmem [resolvable:$true] %s169_s29 }
  0x12   : > { %s1449_s27 = scalar_select %p1256_p8, 1, 0 }
  0x13   : > { %p955_p9 = pneg %p1256_p8  ;;  %s1024_s8 = scalar_lea.hbm %s1437_s1, 6144 }
  0x14   : > { %p1025_p12 = scmp.ne.s32.totalorder %s1437_s1, %s1024_s8  ;;  %p1031_p5 = scmp.lt.u32.totalorder %s1024_s8, %s1437_s1 }
  0x15   : > { %p1265_p11 = pnand %p955_p9, %p1236_p1 }
  0x17   : > { %p1026_p13 = pneg %p1265_p11 }
  0x19   : > { %p1027_p0 = pnand %p1026_p13, %p1025_p12 }
  0x1b   : > { %p1028_p3 = pneg %p1027_p0 }
  0x1d   : > { %p1033_p7 = pnand %p1031_p5, %p1028_p3 }
  0x1f   : > { %1036 = shalt.err (!%p1033_p7)
}
  0x20   : > { %s1037_s13 = scalar_lea.vmem %s170_s29, 6144  ;;  %p1045_p1 = scmp.lt.s32.totalorder %s170_s29, %s170_s29 }
  0x21   : > { %p1038_p9 = scmp.ne.s32.totalorder %s170_s29, %s1037_s13  ;;  %p1046_p4 = scmp.lt.s32.totalorder %s1037_s13, %s1037_s13 }
  0x23   : > { %p1040_p10 = pnand %p1038_p9, %p1026_p13  ;;  %p1047_p8 = por %p1046_p4, %p1045_p1 }
  0x25   : > { %p1041_p6 = pneg %p1040_p10 }
  0x27   : > { %p1048_p2 = pnand %p1047_p8, %p1041_p6 }
  0x29   : > { %1051 = shalt.err (!%p1048_p2)
}
  0x2a   : > { %s1171_s14 = smov 128   ;;  %s1172_s21 = smov 8  }
  0x2b   : > { %958 = dma.hbm_to_vmem [thread:$0]  (!%p1265_p11), %s1437_s1, 6144, %s170_s29, [#allocation6], %s1171_s14, %s1171_s14, %s1172_s21  }
  0x2c   : > { %p31_p1 = scmp.ge.s32.totalorder %s30_s5, 2  ;;  %s42_s6 = sadd.s32 1, %s1156_s17 }
  0x2d   : > { %p49_p2 = scmp.ne.s32.totalorder %s1156_s17, %s1152_s16  ;;  %p50_p4 = scmp.eq.s32.totalorder %s1168_s20, 0 }
  0x2e   : > { %s1465_s5 = smov (%p31_p1, %s30_s5), 0  ;;  %p1451_p8 = scmp.ne.s32.totalorder %s1446_s24, 0 }
  0x2f   : > { %p51_p6 = por %p50_p4, %p49_p2  ;;  %s37_s30 = ssub.s32 %s1164_s19, %s1465_s5 }
  0x30   : > { %p1297_p10 = por %p1451_p8, %p49_p2  ;;  %p968_p12 = scmp.lt.s32.totalorder %s1168_s20, 2 }
  0x31   : > { %p40_p13 = scmp.eq.s32.totalorder %s37_s30, 0  ;;  %s189_s8 = sand.u32 1, %s1156_s17  }
  0x32   : > { %s944_s9 = smul.u32 24, %s189_s8  ;;  %p1309_p11 = pnand %p968_p12, %p51_p6 }
  0x33   : > { %s1306_s10 = scalar_select %p40_p13, %s1156_s17, %s42_s6  }
  0x34   : > { %s945_s29 = smul.u32 384, %s1164_s19  ;;  %s193_s11 = scalar_lea.vmem [#allocation2], %s944_s9 }
  0x35   : > { %s202_s12 = sshll.u32 %s193_s11, 4  ;;  %s1320_s6 = scalar_lea.sflag [#allocation3], %s189_s8  ;;  %s1318_s12 = int_to_ptr.vmem [resolvable:$true] %s202_s12 }
  0x36   : > { %s1316_s28 = scalar_lea.hbm %s1436_s0, %s945_s29  ;;  %p1054_p3 = pneg %p1309_p11 }
  0x37   : > { %s1052_s30 = scalar_lea.hbm %s1316_s28, 384  ;;  %s1057_s29 = scalar_lea.hbm %s1436_s0, 768 }
  0x38   : > { %p1053_p0 = scmp.ne.s32.totalorder %s1316_s28, %s1052_s30  ;;  %p1058_p9 = scmp.lt.u32.totalorder %s1316_s28, %s1436_s0 }
  0x39   : > { %p1059_p1 = scmp.lt.u32.totalorder %s1057_s29, %s1052_s30  ;;  %p1061_p4 = scmp.lt.u32.totalorder %s1052_s30, %s1316_s28 }
  0x3a   : > { %p1055_p5 = pnand %p1054_p3, %p1053_p0 }
  0x3b   : > { %p1060_p2 = por %p1059_p1, %p1058_p9 }
  0x3c   : > { %p1056_p7 = pneg %p1055_p5 }
  0x3d   : > { %p1062_p6 = por %p1061_p4, %p1060_p2 }
  0x3f   : > { %p1063_p8 = pnand %p1062_p6, %p1056_p7 }
  0x41   : > { %1066 = shalt.err (!%p1063_p8)
}
  0x42   : > { %s1067_s8 = scalar_lea.vmem %s1318_s12, 384  ;;  %s1173_s9 = smov [#allocation2]  }
  0x43   : > { %p1068_p12 = scmp.ne.s32.totalorder %s1318_s12, %s1067_s8  ;;  %s1072_s11 = sshll.u32 %s1173_s9, 4  ;;  %s1073_s11 = int_to_ptr.vmem [resolvable:$false] %s1072_s11 }
  0x44   : > { %s1074_s22 = scalar_lea.vmem %s1073_s11, 768  ;;  %p1075_p5 = scmp.lt.s32.totalorder %s1318_s12, %s1073_s11 }
  0x45   : > { %p1070_p13 = pnand %p1068_p12, %p1054_p3  ;;  %p1076_p9 = scmp.lt.s32.totalorder %s1074_s22, %s1067_s8 }
  0x47   : > { %p1071_p0 = pneg %p1070_p13  ;;  %p1077_p1 = por %p1076_p9, %p1075_p5 }
  0x49   : > { %p1078_p2 = pnand %p1077_p1, %p1071_p0 }
  0x4b   : > { %1081 = shalt.err (!%p1078_p2)
}
  0x4c   : > { %962 = dma.hbm_to_vmem [thread:$0]  (!%p1309_p11), %s1316_s28, 384, %s1318_s12, %s1320_s6, %s1171_s14, %s1171_s14, %s1172_s21  }
  0x4d   : > { %p1454_p3 = scmp.ne.s32.totalorder %s1449_s27, 0 }
  0x4e   : > { %s1354_s30 = sand.u32 (!%p1454_p3), 1, %s1152_s16   ;;  %p1455_p7 = scmp.ne.s32.totalorder (!%p1454_p3), %s1447_s25, 0 }
  0x4f   : > { %214 = sbr.rel (%p1454_p3) target bundleno = 393 (0x189), region = 36  ;;  %s217_s24 = scalar_lea.sflag (!%p1454_p3), [#allocation3], %s1354_s30 }
  0x50   : > { %s946_s29 = smul.u32 (!%p1454_p3), 24, %s1354_s30 }
  0x52   : > { %s1358_s8 = scalar_lea.vmem (!%p1454_p3), [#allocation2], %s946_s29 }
  0x56   : > { %1135 = dma.done.wait (%p1455_p7), %s217_s24, 384  }
  0x57   : > { %1137 = vsyncadd (%p1455_p7), %s217_s24, 4294966912  ;;  %p1456_p11 = scmp.ne.s32.totalorder %s1445_s23, 0 }
  0x59   : > { %1139 = dma.done.wait (%p1456_p11), [#allocation6], 6144  }
  0x5a   : > { %1141 = vsyncadd (%p1456_p11), [#allocation6], 4294961152  ;;  %v252_v0 = vld [vmem:[#allocation5] sm:$0xff]  ;;  %v253_v1 = vld [vmem:[#allocation5 + $0x8] sm:$0xff]  ;;  %s676_s23 = sshll.u32 %s1354_s30, 4  ;;  %s684_s28 = sshll.u32 %s1160_s18, 8 }
  0x5b   : > { %v254_v2 = vld [vmem:[#allocation5 + $0x10] sm:$0xff]  ;;  %v876_v3 = vpack.c.bf16 %v253_v1, %v252_v0  ;;  %v255_v4 = vld [vmem:[#allocation5 + $0x18] sm:$0xff]  ;;  %v256_v6 = vld [vmem:[#allocation5 + $0x20] sm:$0xff]  ;;  %s248_s12 = scalar_lea.vmem [#allocation7], %s676_s23  ;;  %s1387_s11 = scalar_lea.hbm %s1440_s4, %s684_s28 }
  0x5c   : > { %v880_v5 = vpack.c.bf16 %v255_v4, %v254_v2  ;;  %v257_v7 = vld [vmem:[#allocation5 + $0x28] sm:$0xff]  ;;  %v271_v9 = vld [vmem:[#allocation5 + $0x80] sm:$0xff]  ;;  %v258_v11 = vld [vmem:[#allocation5 + $0x30] sm:$0xff]  ;;  %s571_s13 = sshll.u32 %s248_s12, 4  ;;  %s556_s22 = scalar_lea.sflag [#allocation4], %s1354_s30  ;;  %s1382_s13 = int_to_ptr.vmem [resolvable:$true] %s571_s13 }
  0x5d   : > { %877 = vmatprep.subr.bf16.mxu0 %v876_v3  ;;  %v884_v8 = vpack.c.bf16 %v257_v7, %v256_v6  ;;  %v272_v10 = vld [vmem:[#allocation5 + $0x88] sm:$0xff]  ;;  %v259_v12 = vld [vmem:[#allocation5 + $0x38] sm:$0xff]  ;;  %v273_v15 = vld [vmem:[#allocation5 + $0x90] sm:$0xff]  ;;  %s1082_s29 = scalar_lea.vmem %s1382_s13, 256  ;;  %s1174_s18 = smov [#allocation7]  }
  0x5e   : > { %879 = vmatpush3.bf16.msra.mxu0 %v876_v3  ;;  %v844_v13 = vpack.c.bf16 %v272_v10, %v271_v9  ;;  %v250_v14 = vld [vmem:[%s1358_s8] sm:$0xff]  ;;  %v274_v16 = vld [vmem:[#allocation5 + $0x98] sm:$0xff]  ;;  %v275_v18 = vld [vmem:[#allocation5 + $0xa0] sm:$0xff]  ;;  %v888_v19 = vpack.c.bf16 %v259_v12, %v258_v11  ;;  %p1083_p4 = scmp.ne.s32.totalorder %s1382_s13, %s1082_s29  ;;  %s1086_s24 = sshll.u32 %s1174_s18, 4  ;;  %s1087_s24 = int_to_ptr.vmem [resolvable:$false] %s1086_s24 }
  0x5f   : > { %881 = vmatprep.subr.bf16.mxu0 %v880_v5  ;;  %806 = vmatprep.mubr.f32.mxu0 %v250_v14  ;;  %v848_v17 = vpack.c.bf16 %v274_v16, %v273_v15  ;;  %v276_v20 = vld [vmem:[#allocation5 + $0xa8] sm:$0xff]  ;;  %v260_v21 = vld [vmem:[#allocation5 + $0x40] sm:$0xff]  ;;  %v277_v24 = vld [vmem:[#allocation5 + $0xb0] sm:$0xff]  ;;  %p1089_p12 = scmp.lt.s32.totalorder %s1382_s13, %s1087_s24 }
  0x60   : > { %845 = vmatprep.subr.bf16.mxu1 %v844_v13  ;;  %v261_v22 = vld [vmem:[#allocation5 + $0x48] sm:$0xff]  ;;  %v852_v23 = vpack.c.bf16 %v276_v20, %v275_v18  ;;  %v278_v25 = vld [vmem:[#allocation5 + $0xb8] sm:$0xff]  ;;  %v262_v27 = vld [vmem:[#allocation5 + $0x50] sm:$0xff]  ;;  %p1084_p6 = pnand %p1083_p4, %p1297_p10 }
  0x61   : > { %847 = vmatpush3.bf16.msra.mxu1 %v844_v13  ;;  %v892_v26 = vpack.c.bf16 %v261_v22, %v260_v21  ;;  %v263_v28 = vld [vmem:[#allocation5 + $0x58] sm:$0xff]  ;;  %v856_v29 = vpack.c.bf16 %v278_v25, %v277_v24  ;;  %v279_v30 = vld [vmem:[#allocation5 + $0xc0] sm:$0xff]  ;;  %v280_v31 = vld [vmem:[#allocation5 + $0xc8] sm:$0xff] }
  0x62   : > { %883 = vmatpush3.bf16.msra.mxu0 %v880_v5  ;;  %849 = vmatprep.subr.bf16.mxu1 %v848_v17  ;;  %v268_v32 = vld [vmem:[%s1358_s8 + $0x1] sm:$0xff]  ;;  %v896_v33 = vpack.c.bf16 %v263_v28, %v262_v27  ;;  %v264_v34 = vld [vmem:[#allocation5 + $0x60] sm:$0xff]  ;;  %v860_v36 = vpack.c.bf16 %v280_v31, %v279_v30  ;;  %p1085_p8 = pneg %p1084_p6 }
  0x63   : > { %885 = vmatprep.subr.bf16.mxu0 %v884_v8  ;;  %v265_v35 = vld [vmem:[#allocation5 + $0x68] sm:$0xff]  ;;  %771 = vmatprep.mubr.f32.mxu1 %v268_v32  ;;  %v281_v37 = vld [vmem:[#allocation5 + $0xd0] sm:$0xff]  ;;  %v282_v38 = vld [vmem:[#allocation5 + $0xd8] sm:$0xff] }
  0x64   : > { %v900_v39 = vpack.c.bf16 %v265_v35, %v264_v34  ;;  %v266_v40 = vld [vmem:[#allocation5 + $0x70] sm:$0xff]  ;;  %v267_v41 = vld [vmem:[#allocation5 + $0x78] sm:$0xff]  ;;  %v864_v42 = vpack.c.bf16 %v282_v38, %v281_v37  ;;  %v283_v43 = vld [vmem:[#allocation5 + $0xe0] sm:$0xff] }
  0x65   : > { %851 = vmatpush3.bf16.msra.mxu1 %v848_v17  ;;  %v284_v44 = vld [vmem:[#allocation5 + $0xe8] sm:$0xff]  ;;  %v904_v45 = vpack.c.bf16 %v267_v41, %v266_v40  ;;  %v440_v46 = vld [vmem:[#allocation5 + $0x100] sm:$0xff]  ;;  %v285_v49 = vld [vmem:[#allocation5 + $0xf0] sm:$0xff] }
  0x66   : > { %887 = vmatpush3.bf16.msra.mxu0 %v884_v8  ;;  %853 = vmatprep.subr.bf16.mxu1 %v852_v23  ;;  %v441_v47 = vld [vmem:[#allocation5 + $0x108] sm:$0xff]  ;;  %v868_v48 = vpack.c.bf16 %v284_v44, %v283_v43  ;;  %v286_v50 = vld [vmem:[#allocation5 + $0xf8] sm:$0xff]  ;;  %v442_v52 = vld [vmem:[#allocation5 + $0x110] sm:$0xff] }
  0x67   : > { %889 = vmatprep.subr.bf16.mxu0 %v888_v19  ;;  %v908_v51 = vpack.c.bf16 %v441_v47, %v440_v46  ;;  %v443_v53 = vld [vmem:[#allocation5 + $0x118] sm:$0xff]  ;;  %v872_v54 = vpack.c.bf16 %v286_v50, %v285_v49  ;;  %v444_v58 = vld [vmem:[#allocation5 + $0x120] sm:$0xff]  ;;  %v445_v59 = vld [vmem:[#allocation5 + $0x128] sm:$0xff] }
  0x68   : > { %v251_v55 = vld [vmem:[%s1358_s8 + $0x8] sm:$0xff]  ;;  %v912_v56 = vpack.c.bf16 %v443_v53, %v442_v52  ;;  %v916_v60 = vpack.c.bf16 %v445_v59, %v444_v58  ;;  %v448_v1 = vld [vmem:[#allocation5 + $0x140] sm:$0xff]  ;;  %v449_v2 = vld [vmem:[#allocation5 + $0x148] sm:$0xff] }
  0x69   : > { %855 = vmatpush3.bf16.msra.mxu1 %v852_v23  ;;  %v437_v57 = vld [vmem:[%s1358_s8 + $0x2] sm:$0xff]  ;;  %v924_v3 = vpack.c.bf16 %v449_v2, %v448_v1  ;;  %v452_v7 = vld [vmem:[#allocation5 + $0x160] sm:$0xff] }
  0x6a   : > { %891 = vmatpush3.bf16.msra.mxu0 %v888_v19  ;;  %857 = vmatprep.subr.bf16.mxu1 %v856_v29  ;;  %v269_v61 = vld [vmem:[%s1358_s8 + $0x9] sm:$0xff]  ;;  %v453_v8 = vld [vmem:[#allocation5 + $0x168] sm:$0xff]  ;;  %v677_v17 = vld [vmem:[%s1438_s2] ss:$0 sm:$0xff] }
  0x6b   : > { %893 = vmatprep.subr.bf16.mxu0 %v892_v26  ;;  %v446_v62 = vld [vmem:[#allocation5 + $0x130] sm:$0xff]  ;;  %v447_v63 = vld [vmem:[#allocation5 + $0x138] sm:$0xff]  ;;  %v932_v9 = vpack.c.bf16 %v453_v8, %v452_v7 }
  0x6c   : > { %v920_v0 = vpack.c.bf16 %v447_v63, %v446_v62  ;;  %v450_v4 = vld [vmem:[#allocation5 + $0x150] sm:$0xff]  ;;  %v451_v5 = vld [vmem:[#allocation5 + $0x158] sm:$0xff] }
  0x6d   : > { %859 = vmatpush3.bf16.msra.mxu1 %v856_v29  ;;  %v928_v6 = vpack.c.bf16 %v451_v5, %v450_v4  ;;  %v454_v10 = vld [vmem:[#allocation5 + $0x170] sm:$0xff]  ;;  %v455_v11 = vld [vmem:[#allocation5 + $0x178] sm:$0xff] }
  0x6e   : > { %895 = vmatpush3.bf16.msra.mxu0 %v892_v26  ;;  %861 = vmatprep.subr.bf16.mxu1 %v860_v36  ;;  %v936_v12 = vpack.c.bf16 %v455_v11, %v454_v10  ;;  %v438_v13 = vld [vmem:[%s1358_s8 + $0xa] sm:$0xff]  ;;  %v678_v20 = vld [vmem:[%s1439_s3] ss:$0 sm:$0xff]  ;;  %s1088_s8 = scalar_lea.vmem %s1087_s24, 512 }
  0x6f   : > { %897 = vmatprep.subr.bf16.mxu0 %v896_v33  ;;  %p1090_p13 = scmp.lt.s32.totalorder %s1088_s8, %s1082_s29 }
  0x71   : > { %863 = vmatpush3.bf16.msra.mxu1 %v860_v36  ;;  %p1091_p0 = por %p1090_p13, %p1089_p12 }
  0x72   : > { %899 = vmatpush3.bf16.msra.mxu0 %v896_v33  ;;  %865 = vmatprep.subr.bf16.mxu1 %v864_v42 }
  0x73   : > { %901 = vmatprep.subr.bf16.mxu0 %v900_v39  ;;  %p1092_p5 = pnand %p1091_p0, %p1085_p8 }
  0x75   : > { %867 = vmatpush3.bf16.msra.mxu1 %v864_v42 }
  0x76   : > { %903 = vmatpush3.bf16.msra.mxu0 %v900_v39  ;;  %869 = vmatprep.subr.bf16.mxu1 %v868_v48 }
  0x77   : > { %905 = vmatprep.subr.bf16.mxu0 %v904_v45 }
  0x79   : > { %871 = vmatpush3.bf16.msra.mxu1 %v868_v48 }
  0x7a   : > { %907 = vmatpush3.bf16.msra.mxu0 %v904_v45  ;;  %873 = vmatprep.subr.bf16.mxu1 %v872_v54 }
  0x7b   : > { %909 = vmatprep.subr.bf16.mxu0 %v908_v51 }
  0x7d   : > { %807 = vmatmul.mubr.f32.vlgmr.msra.gmra.mrb[0].mxu0 %v251_v55  ;;  %875 = vmatpush3.bf16.msra.mxu1 %v872_v54 }
  0x7e   : > { %911 = vmatpush3.bf16.msra.mxu0 %v908_v51  ;;  %841 = vmatprep.mubr.f32.mxu0 %v437_v57 }
  0x7f   : > { %913 = vmatprep.subr.bf16.mxu0 %v912_v56 }
  0x80   : > { %772 = vmatmul.mubr.f32.vlgmr.msra.gmra.mrb[0].mxu1 %v269_v61 }
  0x82   : > { %915 = vmatpush3.bf16.msra.mxu0 %v912_v56 }
  0x83   : > { %917 = vmatprep.subr.bf16.mxu0 %v916_v60 }
  0x86   : > { %919 = vmatpush3.bf16.msra.mxu0 %v916_v60 }
  0x87   : > { %921 = vmatprep.subr.bf16.mxu0 %v920_v0 }
  0x8a   : > { %923 = vmatpush3.bf16.msra.mxu0 %v920_v0 }
  0x8b   : > { %925 = vmatprep.subr.bf16.mxu0 %v924_v3 }
  0x8e   : > { %927 = vmatpush3.bf16.msra.mxu0 %v924_v3 }
  0x8f   : > { %929 = vmatprep.subr.bf16.mxu0 %v928_v6 }
  0x92   : > { %931 = vmatpush3.bf16.msra.mxu0 %v928_v6 }
  0x93   : > { %933 = vmatprep.subr.bf16.mxu0 %v932_v9 }
  0x96   : > { %935 = vmatpush3.bf16.msra.mxu0 %v932_v9 }
  0x97   : > { %937 = vmatprep.subr.bf16.mxu0 %v936_v12 }
  0x9a   : > { %939 = vmatpush3.bf16.msra.mxu0 %v936_v12 }
  0x9d   : > { %842 = vmatmul.mubr.f32.vlgmr.msra.gmra.mrb[0].mxu0 %v438_v13 }
 0x153   : > { %v773_v14 = vpop.f32.mrb[0].mxu1 }
 0x154   : > { %v353_v15 = vpop.f32.mrb[1].mxu1 }
 0x170   : > { %v843_v16 = vpop.f32.mrb[0].mxu0 }
 0x171   : > { %v940_v18 = vadd.f32 %v843_v16, %v773_v14  ;;  %v522_v19 = vpop.f32.mrb[1].mxu0 }
 0x172   : > { %v941_v21 = vadd.f32 %v522_v19, %v353_v15 }
 0x173   : > { %v541_v22 = vmul.f32 %v940_v18, %v677_v17 }
 0x174   : > { %v540_v23 = vmul.f32 %v941_v21, %v677_v17 }
 0x175   : > { %v550_v24 = vadd.f32 %v678_v20, %v541_v22 }
 0x176   : > { %v549_v25 = vadd.f32 %v678_v20, %v540_v23 }
 0x177   : > { %v552_v26 = vmax.f32 %v550_v24, 0.0 }
 0x178   : > { %v551_v27 = vmax.f32 %v549_v25, 0.0 }
 0x179   : > { %554 = vst [vmem:[%s248_s12 + $0x8] sm:$0xff] %v552_v26 }
 0x17a   : > { %553 = vst [vmem:[%s248_s12] sm:$0xff] %v551_v27 }
 0x17b   : > { %1095 = shalt.err (!%p1092_p5)
}
 0x17c   : > { %s1096_s23 = scalar_lea.hbm %s1387_s11, 256  ;;  %s1100_s14 = scalar_lea.hbm %s1440_s4, 512 }
 0x17d   : > { %p1097_p9 = scmp.ne.s32.totalorder %s1387_s11, %s1096_s23  ;;  %p1101_p3 = scmp.lt.u32.totalorder %s1387_s11, %s1440_s4 }
 0x17e   : > { %p1102_p7 = scmp.lt.u32.totalorder %s1100_s14, %s1096_s23  ;;  %p1104_p4 = scmp.lt.u32.totalorder %s1096_s23, %s1387_s11 }
 0x17f   : > { %p1098_p1 = pnand %p1097_p9, %p1297_p10 }
 0x180   : > { %p1103_p11 = por %p1102_p7, %p1101_p3 }
 0x181   : > { %p1099_p2 = pneg %p1098_p1 }
 0x182   : > { %p1105_p6 = por %p1104_p4, %p1103_p11 }
 0x184   : > { %p1106_p8 = pnand %p1105_p6, %p1099_p2 }
 0x186   : > { %1109 = shalt.err (!%p1106_p8)
}
 0x187   : > { %s1175_s28 = smov 128   ;;  %s1176_s6 = smov 8  }
 0x188   : > { %953 = dma.vmem_to_hbm [thread:$0]  (%p1297_p10), %s1382_s13, 256, %s1387_s11, %s556_s22, %s1175_s28, %s1175_s28, %s1176_s6  }
 0x189 PF: > { %s586_s9 = sand.u32 1, %s1148_s15   ;;  %p1457_p12 = scmp.ne.s32.totalorder %s1448_s26, 0 }
 0x18a   : > { %p1458_p13 = scmp.ge.s32.totalorder %s1168_s20, 2  ;;  %s587_s29 = scalar_lea.sflag [#allocation4], %s586_s9 }
 0x18c   : > { %p964_p0 = pnand %p1458_p13, %p1457_p12 }
 0x18e   : > { %1143 = dma.done.wait (!%p964_p0), %s587_s29, 256  }
 0x18f   : > { %1145 = vsyncadd (!%p964_p0), %s587_s29, 4294967040  ;;  %s21_s20 = sadd.s32 1, %s1168_s20   ;;  %s1459_s15 = smov %s1152_s16 }
 0x190   : > { %p18_p5 = scmp.ge.s32.totalorder %s21_s20, 4   ;;  %s1460_s16 = smov %s1156_s17 }
 0x191   : > { %s1461_s17 = smov %s1306_s10  ;;  %s1462_s18 = smov %s1164_s19 }
 0x192   : > { %s1463_s19 = smov %s1465_s5  ;;  %20 = sbr.rel (!%p18_p5) target bundleno = 7 (0x7), region = 87 }
 0x199   :  { %592 = vsyncpa [#allocation3], 1 }
 0x19a   :  { %594 = vsyncpa [#allocation3 + $0x1], 1 }
 0x19b   :  { %595 = vsyncpa [#allocation6], 1 }
 0x19c   :  { %596 = vsyncpa [#allocation4], 1 }
 0x19d   :  { %598 = vsyncpa [#allocation4 + $0x1], 1 }

</bundles_post_ra>
